<compile_context>
chip_gen: v7x
topology: tpu7x:2x2x1
jax: 0.10.0
libtpu: 0.0.40
codegen_flags: <defaults>
</compile_context>

<pallas_src>
import functools

import jax
import jax.numpy as jnp
from jax import lax
from jax.experimental import pallas as pl
from jax.experimental.pallas import tpu as pltpu


# --------------------------------------------------------------------------
# Fused kernel: one batch element per grid step.
# --------------------------------------------------------------------------
def _mixpool_fused_kernel(patch_ref, mpool_ref, wa_ref, sa_ref, ba_ref,
                          wf2_ref, bf2_ref, w1_ref, s1_ref, b1_ref,
                          o_ref, *, H, W, cpad, cout_f, cout_half):
    # patch_ref : (1, 9*cpad, HW)  bf16   im2col of x (zero halo baked in)
    # mpool_ref : (1, 1, HW)       f32    MaxPool2d(m), lane-dense
    # wa_ref    : (cout_f+cout_half, 9*cpad) bf16  [fmask-conv ; conv2] weights
    # sa/ba_ref : (cout_f+cout_half, 1) f32        folded BN scale / bias
    # wf2/bf2   : (cout_f, 1), (1, 1)   f32        1x1 logit conv
    # w1_ref    : (cout_half, 9*cpad) bf16         conv1 weights
    # s1/b1_ref : (cout_half, 1) f32               folded BN scale / bias
    # o_ref     : (1, cout_f, HW) f32              [conv1(x*gate) ; conv2(x)]
    HW = H * W
    patch = patch_ref[0]                                    # (9*cpad, HW) bf16

    # fmask-branch conv3x3 and conv2 branch share one MXU matmul (f32 accum).
    ya = jnp.dot(wa_ref[...], patch, preferred_element_type=jnp.float32)
    ya = jnp.maximum(ya * sa_ref[...] + ba_ref[...], 0.0)   # BN(eval) + ReLU
    f = ya[:cout_f]                                         # (cout_f, HW)
    y2 = ya[cout_f:]                                        # (cout_half, HW)

    # 1x1 conv -> logit; sigmoid(z) > 0.5  <=>  z > 0 (kept in f32).
    z = jnp.sum(f * wf2_ref[...], axis=0, keepdims=True) + bf2_ref[...]
    gate = jnp.where(jnp.logical_or(z > 0.0, mpool_ref[0] != 0.0), 1.0, 0.0)

    # Gated im2col patch: for tap (dy, dx) multiply by the gate of the source
    # pixel, i.e. gate shifted by off = (dy-1)*W + (dx-1) in the flat index.
    # Wrapped lanes only hit patch entries that read the zero halo, so a plain
    # circular lane rotate (slice + concat) is exact; no masks needed.
    blocks = []
    for dy in range(3):
        for dx in range(3):
            s = ((dy - 1) * W + (dx - 1)) % HW
            g = gate if s == 0 else jnp.concatenate(
                [gate[:, s:], gate[:, :s]], axis=1)
            blocks.append(jnp.broadcast_to(g, (cpad, HW)))
    gmul = jnp.concatenate(blocks, axis=0).astype(patch.dtype)   # (9*cpad, HW)
    patch1 = patch * gmul                                        # exact 0/1 gate

    # conv1 branch on the gated input.
    y1 = jnp.dot(w1_ref[...], patch1, preferred_element_type=jnp.float32)
    y1 = jnp.maximum(y1 * s1_ref[...] + b1_ref[...], 0.0)

    # channel-concat [conv1 ; conv2] written as one lane-dense store.
    o_ref[0] = jnp.concatenate([y1, y2], axis=0).astype(o_ref.dtype)


# --------------------------------------------------------------------------
# Parameter setup (deterministic, synthetic) and repacking
# --------------------------------------------------------------------------
def init_params(key, in_c, out_c):
    ks = jax.random.split(key, 8)
    p = {
        "wf": 0.1 * jax.random.normal(ks[0], (out_c, in_c, 3, 3), jnp.float32),
        "bf": 0.05 * jax.random.normal(ks[1], (out_c,), jnp.float32),
        "wf2": 0.3 * jax.random.normal(ks[2], (1, out_c, 1, 1), jnp.float32),
        "bf2": 0.05 * jax.random.normal(ks[3], (1,), jnp.float32),
        "w1": 0.1 * jax.random.normal(ks[4], (out_c // 2, in_c, 3, 3), jnp.float32),
        "b1": 0.05 * jax.random.normal(ks[5], (out_c // 2,), jnp.float32),
        "w2": 0.1 * jax.random.normal(ks[6], (out_c // 2, in_c, 3, 3), jnp.float32),
        "b2": 0.05 * jax.random.normal(ks[7], (out_c // 2,), jnp.float32),
    }
    # BatchNorm (eval mode): gamma=1, beta=0, running_mean=0, running_var=1
    for name, c in (("f", out_c), ("c1", out_c // 2), ("c2", out_c // 2)):
        p[name + "_gamma"] = jnp.ones((c,), jnp.float32)
        p[name + "_beta"] = jnp.zeros((c,), jnp.float32)
        p[name + "_mean"] = jnp.zeros((c,), jnp.float32)
        p[name + "_var"] = jnp.ones((c,), jnp.float32)
    return p


def _fold_bn(conv_b, gamma, beta, mean, var, eps=1e-5):
    scale = gamma / jnp.sqrt(var + eps)
    bias = (conv_b - mean) * scale + beta
    return scale, bias


def _pack_w3x3(w_oihw, cpad):
    # (Cout, Cin, 3, 3) -> (Cout, 9*cpad); column = (ky*3+kx)*cpad + cin.
    cout, cin = w_oihw.shape[0], w_oihw.shape[1]
    wt = jnp.transpose(w_oihw, (0, 2, 3, 1))                 # (Cout, ky, kx, Cin)
    wt = jnp.pad(wt, ((0, 0), (0, 0), (0, 0), (0, cpad - cin)))
    return wt.reshape(cout, 9 * cpad)


def prepare_kernel_params(p):
    out_c, in_c = p["wf"].shape[0], p["wf"].shape[1]
    cpad = ((in_c + 7) // 8) * 8                             # pad Cin to a sublane tile
    kp = {"cpad": cpad, "out_c": out_c, "in_c": in_c}

    wf = _pack_w3x3(p["wf"], cpad)
    w2 = _pack_w3x3(p["w2"], cpad)
    w1 = _pack_w3x3(p["w1"], cpad)
    sf, bfb = _fold_bn(p["bf"], p["f_gamma"], p["f_beta"], p["f_mean"], p["f_var"])
    s2, b2b = _fold_bn(p["b2"], p["c2_gamma"], p["c2_beta"], p["c2_mean"], p["c2_var"])
    s1, b1b = _fold_bn(p["b1"], p["c1_gamma"], p["c1_beta"], p["c1_mean"], p["c1_var"])

    # fmask-conv and conv2 fused along Cout (rows 0..out_c = fmask, rest = conv2)
    kp["wa"] = jnp.concatenate([wf, w2], axis=0).astype(jnp.bfloat16)
    kp["sa"] = jnp.concatenate([sf, s2]).reshape(-1, 1).astype(jnp.float32)
    kp["ba"] = jnp.concatenate([bfb, b2b]).reshape(-1, 1).astype(jnp.float32)
    kp["w1"] = w1.astype(jnp.bfloat16)
    kp["s1"] = s1.reshape(-1, 1).astype(jnp.float32)
    kp["b1"] = b1b.reshape(-1, 1).astype(jnp.float32)
    kp["wf2"] = p["wf2"][:, :, 0, 0].reshape(out_c, 1).astype(jnp.float32)
    kp["bf2"] = p["bf2"].reshape(1, 1).astype(jnp.float32)
    return kp


# --------------------------------------------------------------------------
# MixPool forward (single fused Pallas kernel)
# --------------------------------------------------------------------------
def mixpool_forward(kp, x_nchw, m_nchw):
    N, Cin, H, W = x_nchw.shape
    HW = H * W
    cpad, out_c = kp["cpad"], kp["out_c"]
    cout_half = out_c // 2
    K = 9 * cpad
    CA = out_c + cout_half

    # im2col of x with a 1-pixel zero halo (single pad, reused by all branches),
    # channels zero-padded to cpad, cast to bf16 for the MXU.
    xp = jnp.pad(x_nchw.astype(jnp.float32),
                 ((0, 0), (0, cpad - Cin), (1, 1), (1, 1)))
    taps = [xp[:, :, dy:dy + H, dx:dx + W].reshape(N, 1, cpad, HW)
            for dy in range(3) for dx in range(3)]
    patch = jnp.concatenate(taps, axis=1).reshape(N, K, HW).astype(jnp.bfloat16)

    # External-mask MaxPool2d((Hm//H, Wm//W)) in the wrapper -> lane-dense (N,1,HW).
    Nm, Cm, Hm, Wm = m_nchw.shape
    assert Cm == 1, "MixPool kernel assumes a single-channel external mask"
    assert Hm % H == 0 and Wm % W == 0, "mask size must be a multiple of x size"
    kh, kw = Hm // H, Wm // W
    mpool = (m_nchw.astype(jnp.float32)
             .reshape(N, 1, H, kh, W, kw).max(axis=(3, 5)).reshape(N, 1, HW))

    kernel = functools.partial(_mixpool_fused_kernel, H=H, W=W, cpad=cpad,
                               cout_f=out_c, cout_half=cout_half)

    out = pl.pallas_call(
        kernel,
        out_shape=jax.ShapeDtypeStruct((N, out_c, HW), jnp.float32),
        grid=(N,),
        in_specs=[
            pl.BlockSpec((1, K, HW), lambda n: (n, 0, 0)),        # patch
            pl.BlockSpec((1, 1, HW), lambda n: (n, 0, 0)),        # pooled mask
            pl.BlockSpec((CA, K), lambda n: (0, 0)),              # wa
            pl.BlockSpec((CA, 1), lambda n: (0, 0)),              # sa
            pl.BlockSpec((CA, 1), lambda n: (0, 0)),              # ba
            pl.BlockSpec((out_c, 1), lambda n: (0, 0)),           # wf2
            pl.BlockSpec((1, 1), lambda n: (0, 0)),               # bf2
            pl.BlockSpec((cout_half, K), lambda n: (0, 0)),       # w1
            pl.BlockSpec((cout_half, 1), lambda n: (0, 0)),       # s1
            pl.BlockSpec((cout_half, 1), lambda n: (0, 0)),       # b1
        ],
        out_specs=pl.BlockSpec((1, out_c, HW), lambda n: (n, 0, 0)),
        compiler_params=pltpu.CompilerParams(
            dimension_semantics=("parallel",),
            vmem_limit_bytes=32 * 1024 * 1024,
        ),
    )(patch, mpool, kp["wa"], kp["sa"], kp["ba"], kp["wf2"], kp["bf2"],
      kp["w1"], kp["s1"], kp["b1"])

    # Output is already NCHW-flattened (channel, H*W): pure reshape, no transpose.
    return out.reshape(N, out_c, H, W)


# --------------------------------------------------------------------------
# Pure-JAX reference (NCHW, mirrors the PyTorch module; conv inputs in bf16 to
# match the kernel's precision policy, accumulation in f32).
# --------------------------------------------------------------------------
def mixpool_reference(p, x, m, eps=1e-5):
    dn = ("NCHW", "OIHW", "NCHW")
    xb = x.astype(jnp.bfloat16)

    def conv3(t, w, b):
        y = lax.conv_general_dilated(t, w.astype(jnp.bfloat16), (1, 1),
                                     [(1, 1), (1, 1)], dimension_numbers=dn,
                                     preferred_element_type=jnp.float32)
        return y + b.reshape(1, -1, 1, 1)

    def bn_relu(t, pre):
        g, b_, mu, v = (p[pre + "_gamma"], p[pre + "_beta"],
                        p[pre + "_mean"], p[pre + "_var"])
        y = (t - mu.reshape(1, -1, 1, 1)) / jnp.sqrt(v.reshape(1, -1, 1, 1) + eps)
        y = y * g.reshape(1, -1, 1, 1) + b_.reshape(1, -1, 1, 1)
        return jnp.maximum(y, 0.0)

    f = bn_relu(conv3(xb, p["wf"], p["bf"]), "f")
    z = lax.conv_general_dilated(f, p["wf2"], (1, 1), [(0, 0), (0, 0)],
                                 dimension_numbers=dn) + p["bf2"].reshape(1, -1, 1, 1)
    fmask = jax.nn.sigmoid(z) > 0.5

    N, Cm, Hm, Wm = m.shape
    H, W = x.shape[2], x.shape[3]
    kh, kw = Hm // H, Wm // W
    mp = m.reshape(N, Cm, H, kh, W, kw).max(axis=(3, 5))
    gate = jnp.logical_or(fmask, mp != 0).astype(jnp.float32)

    x1 = (xb.astype(jnp.float32) * gate).astype(jnp.bfloat16)
    y1 = bn_relu(conv3(x1, p["w1"], p["b1"]), "c1")
    y2 = bn_relu(conv3(xb, p["w2"], p["b2"]), "c2")
    return jnp.concatenate([y1, y2], axis=1)


if __name__ == "__main__":
    in_c, out_c = 4, 8
    N, H, W = 2, 16, 16
    Hm, Wm = 32, 32                      # external mask is 2x the spatial size of x

    key = jax.random.PRNGKey(0)
    kx, km, kparam = jax.random.split(key, 3)
    x = jax.random.normal(kx, (N, in_c, H, W), jnp.float32)
    m = (jax.random.uniform(km, (N, 1, Hm, Wm)) > 0.7).astype(jnp.float32)

    raw = init_params(kparam, in_c, out_c)
    kparams = prepare_kernel_params(raw)

    out = jax.block_until_ready(mixpool_forward(kparams, x, m))
    ref = jax.block_until_ready(mixpool_reference(raw, x, m))

    assert out.shape == (N, out_c, H, W), out.shape
    err = float(jnp.max(jnp.abs(out - ref)))
    assert err < 5e-3, err

    print("KERNEL_OK")
</pallas_src>

<mosaic_0001>
module attributes {stable_mosaic.version = 11 : i64} {
  func.func @_mixpool_fused_kernel(%arg0: i32, %arg1: memref<1x72x256xbf16, #tpu.memory_space<vmem>>, %arg2: memref<1x1x256xf32, #tpu.memory_space<vmem>>, %arg3: memref<12x72xbf16, #tpu.memory_space<vmem>>, %arg4: memref<12x1xf32, #tpu.memory_space<vmem>>, %arg5: memref<12x1xf32, #tpu.memory_space<vmem>>, %arg6: memref<8x1xf32, #tpu.memory_space<vmem>>, %arg7: memref<1x1xf32, #tpu.memory_space<vmem>>, %arg8: memref<4x72xbf16, #tpu.memory_space<vmem>>, %arg9: memref<4x1xf32, #tpu.memory_space<vmem>>, %arg10: memref<4x1xf32, #tpu.memory_space<vmem>>, %arg11: memref<1x8x256xf32, #tpu.memory_space<vmem>>) attributes {dimension_semantics = [#tpu.dimension_semantics<parallel>], iteration_bounds = array<i64: 2>, scalar_prefetch = 0 : i64, scratch_operands = 0 : i64, tpu.core_type = #tpu.core_type<tc>, window_params = [{transform_indices = @transform_0, window_bounds = array<i64: 1, 72, 256>}, {transform_indices = @transform_1, window_bounds = array<i64: 1, 1, 256>}, {pipeline_mode = #tpu.pipeline_mode<synchronous>, transform_indices = @transform_2, window_bounds = array<i64: 12, 72>}, {pipeline_mode = #tpu.pipeline_mode<synchronous>, transform_indices = @transform_3, window_bounds = array<i64: 12, 1>}, {pipeline_mode = #tpu.pipeline_mode<synchronous>, transform_indices = @transform_4, window_bounds = array<i64: 12, 1>}, {pipeline_mode = #tpu.pipeline_mode<synchronous>, transform_indices = @transform_5, window_bounds = array<i64: 8, 1>}, {pipeline_mode = #tpu.pipeline_mode<synchronous>, transform_indices = @transform_6, window_bounds = array<i64: 1, 1>}, {pipeline_mode = #tpu.pipeline_mode<synchronous>, transform_indices = @transform_7, window_bounds = array<i64: 4, 72>}, {pipeline_mode = #tpu.pipeline_mode<synchronous>, transform_indices = @transform_8, window_bounds = array<i64: 4, 1>}, {pipeline_mode = #tpu.pipeline_mode<synchronous>, transform_indices = @transform_9, window_bounds = array<i64: 4, 1>}, {transform_indices = @transform_10, window_bounds = array<i64: 1, 8, 256>}]} {
    %c0 = arith.constant 0 : index
    %c0_0 = arith.constant 0 : index
    %c0_1 = arith.constant 0 : index
    %0 = vector.load %arg1[%c0, %c0_0, %c0_1] : memref<1x72x256xbf16, #tpu.memory_space<vmem>>, vector<1x72x256xbf16>
    %1 = vector.shape_cast %0 : vector<1x72x256xbf16> to vector<72x256xbf16>
    %c0_2 = arith.constant 0 : index
    %c0_3 = arith.constant 0 : index
    %2 = vector.load %arg3[%c0_2, %c0_3] : memref<12x72xbf16, #tpu.memory_space<vmem>>, vector<12x72xbf16>
    %cst = arith.constant dense<0.000000e+00> : vector<12x256xf32>
    %3 = tpu.matmul %2, %1, %cst {dimension_numbers = #tpu.dot_dimension_numbers<[1], [0], [0], [1], [0, 0, 1, 1], [], []>} : vector<12x72xbf16>, vector<72x256xbf16>, vector<12x256xf32> -> vector<12x256xf32>
    %c0_4 = arith.constant 0 : index
    %c0_5 = arith.constant 0 : index
    %4 = vector.load %arg4[%c0_4, %c0_5] : memref<12x1xf32, #tpu.memory_space<vmem>>, vector<12x1xf32>
    %5 = vector.broadcast %4 : vector<12x1xf32> to vector<12x256xf32>
    %6 = arith.mulf %3, %5 : vector<12x256xf32>
    %c0_6 = arith.constant 0 : index
    %c0_7 = arith.constant 0 : index
    %7 = vector.load %arg5[%c0_6, %c0_7] : memref<12x1xf32, #tpu.memory_space<vmem>>, vector<12x1xf32>
    %8 = vector.broadcast %7 : vector<12x1xf32> to vector<12x256xf32>
    %9 = arith.addf %6, %8 : vector<12x256xf32>
    %cst_8 = arith.constant 0.000000e+00 : f32
    %10 = vector.broadcast %cst_8 : f32 to vector<12x256xf32>
    %11 = arith.maximumf %9, %10 : vector<12x256xf32>
    %12 = vector.extract_strided_slice %11 {offsets = [0, 0], sizes = [8, 256], strides = [1, 1]} : vector<12x256xf32> to vector<8x256xf32>
    %13 = vector.extract_strided_slice %11 {offsets = [8, 0], sizes = [4, 256], strides = [1, 1]} : vector<12x256xf32> to vector<4x256xf32>
    %c0_9 = arith.constant 0 : index
    %c0_10 = arith.constant 0 : index
    %14 = vector.load %arg6[%c0_9, %c0_10] : memref<8x1xf32, #tpu.memory_space<vmem>>, vector<8x1xf32>
    %15 = vector.broadcast %14 : vector<8x1xf32> to vector<8x256xf32>
    %16 = arith.mulf %12, %15 : vector<8x256xf32>
    %cst_11 = arith.constant dense<0.000000e+00> : vector<256xf32>
    %17 = vector.multi_reduction <add>, %16, %cst_11 [0] : vector<8x256xf32> to vector<256xf32>
    %18 = vector.shape_cast %17 : vector<256xf32> to vector<1x256xf32>
    %c0_12 = arith.constant 0 : index
    %c0_13 = arith.constant 0 : index
    %19 = vector.load %arg7[%c0_12, %c0_13] : memref<1x1xf32, #tpu.memory_space<vmem>>, vector<1x1xf32>
    %20 = vector.broadcast %19 : vector<1x1xf32> to vector<1x256xf32>
    %21 = arith.addf %18, %20 : vector<1x256xf32>
    %cst_14 = arith.constant 0.000000e+00 : f32
    %22 = vector.broadcast %cst_14 : f32 to vector<1x256xf32>
    %23 = arith.cmpf ogt, %21, %22 : vector<1x256xf32>
    %c0_15 = arith.constant 0 : index
    %c0_16 = arith.constant 0 : index
    %c0_17 = arith.constant 0 : index
    %24 = vector.load %arg2[%c0_15, %c0_16, %c0_17] : memref<1x1x256xf32, #tpu.memory_space<vmem>>, vector<1x1x256xf32>
    %25 = vector.shape_cast %24 : vector<1x1x256xf32> to vector<1x256xf32>
    %cst_18 = arith.constant 0.000000e+00 : f32
    %26 = vector.broadcast %cst_18 : f32 to vector<1x256xf32>
    %27 = arith.cmpf one, %25, %26 : vector<1x256xf32>
    %28 = arith.ori %23, %27 : vector<1x256xi1>
    %cst_19 = arith.constant 1.000000e+00 : f32
    %cst_20 = arith.constant 0.000000e+00 : f32
    %29 = vector.broadcast %cst_19 : f32 to vector<1x256xf32>
    %30 = vector.broadcast %cst_20 : f32 to vector<1x256xf32>
    %31 = arith.select %28, %29, %30 : vector<1x256xi1>, vector<1x256xf32>
    %32 = vector.extract_strided_slice %31 {offsets = [0, 239], sizes = [1, 17], strides = [1, 1]} : vector<1x256xf32> to vector<1x17xf32>
    %33 = vector.extract_strided_slice %31 {offsets = [0, 0], sizes = [1, 239], strides = [1, 1]} : vector<1x256xf32> to vector<1x239xf32>
    %34 = tpu.concatenate %32, %33 in 1 : vector<1x17xf32>, vector<1x239xf32> -> vector<1x256xf32>
    %35 = vector.shape_cast %34 : vector<1x256xf32> to vector<1x256xf32>
    %36 = vector.broadcast %35 : vector<1x256xf32> to vector<8x256xf32>
    %37 = vector.extract_strided_slice %31 {offsets = [0, 240], sizes = [1, 16], strides = [1, 1]} : vector<1x256xf32> to vector<1x16xf32>
    %38 = vector.extract_strided_slice %31 {offsets = [0, 0], sizes = [1, 240], strides = [1, 1]} : vector<1x256xf32> to vector<1x240xf32>
    %39 = tpu.concatenate %37, %38 in 1 : vector<1x16xf32>, vector<1x240xf32> -> vector<1x256xf32>
    %40 = vector.shape_cast %39 : vector<1x256xf32> to vector<1x256xf32>
    %41 = vector.broadcast %40 : vector<1x256xf32> to vector<8x256xf32>
    %42 = vector.extract_strided_slice %31 {offsets = [0, 241], sizes = [1, 15], strides = [1, 1]} : vector<1x256xf32> to vector<1x15xf32>
    %43 = vector.extract_strided_slice %31 {offsets = [0, 0], sizes = [1, 241], strides = [1, 1]} : vector<1x256xf32> to vector<1x241xf32>
    %44 = tpu.concatenate %42, %43 in 1 : vector<1x15xf32>, vector<1x241xf32> -> vector<1x256xf32>
    %45 = vector.shape_cast %44 : vector<1x256xf32> to vector<1x256xf32>
    %46 = vector.broadcast %45 : vector<1x256xf32> to vector<8x256xf32>
    %47 = vector.extract_strided_slice %31 {offsets = [0, 255], sizes = [1, 1], strides = [1, 1]} : vector<1x256xf32> to vector<1x1xf32>
    %48 = vector.extract_strided_slice %31 {offsets = [0, 0], sizes = [1, 255], strides = [1, 1]} : vector<1x256xf32> to vector<1x255xf32>
    %49 = tpu.concatenate %47, %48 in 1 : vector<1x1xf32>, vector<1x255xf32> -> vector<1x256xf32>
    %50 = vector.shape_cast %49 : vector<1x256xf32> to vector<1x256xf32>
    %51 = vector.broadcast %50 : vector<1x256xf32> to vector<8x256xf32>
    %52 = vector.shape_cast %31 : vector<1x256xf32> to vector<1x256xf32>
    %53 = vector.broadcast %52 : vector<1x256xf32> to vector<8x256xf32>
    %54 = vector.extract_strided_slice %31 {offsets = [0, 1], sizes = [1, 255], strides = [1, 1]} : vector<1x256xf32> to vector<1x255xf32>
    %55 = vector.extract_strided_slice %31 {offsets = [0, 0], sizes = [1, 1], strides = [1, 1]} : vector<1x256xf32> to vector<1x1xf32>
    %56 = tpu.concatenate %54, %55 in 1 : vector<1x255xf32>, vector<1x1xf32> -> vector<1x256xf32>
    %57 = vector.shape_cast %56 : vector<1x256xf32> to vector<1x256xf32>
    %58 = vector.broadcast %57 : vector<1x256xf32> to vector<8x256xf32>
    %59 = vector.extract_strided_slice %31 {offsets = [0, 15], sizes = [1, 241], strides = [1, 1]} : vector<1x256xf32> to vector<1x241xf32>
    %60 = vector.extract_strided_slice %31 {offsets = [0, 0], sizes = [1, 15], strides = [1, 1]} : vector<1x256xf32> to vector<1x15xf32>
    %61 = tpu.concatenate %59, %60 in 1 : vector<1x241xf32>, vector<1x15xf32> -> vector<1x256xf32>
    %62 = vector.shape_cast %61 : vector<1x256xf32> to vector<1x256xf32>
    %63 = vector.broadcast %62 : vector<1x256xf32> to vector<8x256xf32>
    %64 = vector.extract_strided_slice %31 {offsets = [0, 16], sizes = [1, 240], strides = [1, 1]} : vector<1x256xf32> to vector<1x240xf32>
    %65 = vector.extract_strided_slice %31 {offsets = [0, 0], sizes = [1, 16], strides = [1, 1]} : vector<1x256xf32> to vector<1x16xf32>
    %66 = tpu.concatenate %64, %65 in 1 : vector<1x240xf32>, vector<1x16xf32> -> vector<1x256xf32>
    %67 = vector.shape_cast %66 : vector<1x256xf32> to vector<1x256xf32>
    %68 = vector.broadcast %67 : vector<1x256xf32> to vector<8x256xf32>
    %69 = vector.extract_strided_slice %31 {offsets = [0, 17], sizes = [1, 239], strides = [1, 1]} : vector<1x256xf32> to vector<1x239xf32>
    %70 = vector.extract_strided_slice %31 {offsets = [0, 0], sizes = [1, 17], strides = [1, 1]} : vector<1x256xf32> to vector<1x17xf32>
    %71 = tpu.concatenate %69, %70 in 1 : vector<1x239xf32>, vector<1x17xf32> -> vector<1x256xf32>
    %72 = vector.shape_cast %71 : vector<1x256xf32> to vector<1x256xf32>
    %73 = vector.broadcast %72 : vector<1x256xf32> to vector<8x256xf32>
    %74 = tpu.concatenate %36, %41, %46, %51, %53, %58, %63, %68, %73 in 0 : vector<8x256xf32>, vector<8x256xf32>, vector<8x256xf32>, vector<8x256xf32>, vector<8x256xf32>, vector<8x256xf32>, vector<8x256xf32>, vector<8x256xf32>, vector<8x256xf32> -> vector<72x256xf32>
    %75 = arith.truncf %74 : vector<72x256xf32> to vector<72x256xbf16>
    %76 = arith.mulf %1, %75 : vector<72x256xbf16>
    %c0_21 = arith.constant 0 : index
    %c0_22 = arith.constant 0 : index
    %77 = vector.load %arg8[%c0_21, %c0_22] : memref<4x72xbf16, #tpu.memory_space<vmem>>, vector<4x72xbf16>
    %cst_23 = arith.constant dense<0.000000e+00> : vector<4x256xf32>
    %78 = tpu.matmul %77, %76, %cst_23 {dimension_numbers = #tpu.dot_dimension_numbers<[1], [0], [0], [1], [0, 0, 1, 1], [], []>} : vector<4x72xbf16>, vector<72x256xbf16>, vector<4x256xf32> -> vector<4x256xf32>
    %c0_24 = arith.constant 0 : index
    %c0_25 = arith.constant 0 : index
    %79 = vector.load %arg9[%c0_24, %c0_25] : memref<4x1xf32, #tpu.memory_space<vmem>>, vector<4x1xf32>
    %80 = vector.broadcast %79 : vector<4x1xf32> to vector<4x256xf32>
    %81 = arith.mulf %78, %80 : vector<4x256xf32>
    %c0_26 = arith.constant 0 : index
    %c0_27 = arith.constant 0 : index
    %82 = vector.load %arg10[%c0_26, %c0_27] : memref<4x1xf32, #tpu.memory_space<vmem>>, vector<4x1xf32>
    %83 = vector.broadcast %82 : vector<4x1xf32> to vector<4x256xf32>
    %84 = arith.addf %81, %83 : vector<4x256xf32>
    %cst_28 = arith.constant 0.000000e+00 : f32
    %85 = vector.broadcast %cst_28 : f32 to vector<4x256xf32>
    %86 = arith.maximumf %84, %85 : vector<4x256xf32>
    %87 = tpu.concatenate %86, %13 in 0 : vector<4x256xf32>, vector<4x256xf32> -> vector<8x256xf32>
    %c0_29 = arith.constant 0 : index
    %c0_30 = arith.constant 0 : index
    %c0_31 = arith.constant 0 : index
    %88 = vector.load %arg11[%c0_29, %c0_30, %c0_31] : memref<1x8x256xf32, #tpu.memory_space<vmem>>, vector<1x8x256xf32>
    %89 = vector.shape_cast %88 : vector<1x8x256xf32> to vector<8x256xf32>
    %90 = vector.shape_cast %87 : vector<8x256xf32> to vector<1x8x256xf32>
    tpu.vector_store %arg11[%c0_29, %c0_30, %c0_31], %90 {strides = array<i32>} : memref<1x8x256xf32, #tpu.memory_space<vmem>>, vector<1x8x256xf32>,
    return
  }
  func.func @transform_0(%arg0: i32) -> (i32, i32, i32) {
    %c0_i32 = arith.constant 0 : i32
    %c0_i32_0 = arith.constant 0 : i32
    %c0_i32_1 = arith.constant 0 : i32
    return %arg0, %c0_i32, %c0_i32_0 : i32, i32, i32
  }
  func.func @transform_1(%arg0: i32) -> (i32, i32, i32) {
    %c0_i32 = arith.constant 0 : i32
    %c0_i32_0 = arith.constant 0 : i32
    %c0_i32_1 = arith.constant 0 : i32
    return %arg0, %c0_i32, %c0_i32_0 : i32, i32, i32
  }
  func.func @transform_2(%arg0: i32) -> (i32, i32) {
    %c0_i32 = arith.constant 0 : i32
    %c0_i32_0 = arith.constant 0 : i32
    %c0_i32_1 = arith.constant 0 : i32
    return %c0_i32, %c0_i32_0 : i32, i32
  }
  func.func @transform_3(%arg0: i32) -> (i32, i32) {
    %c0_i32 = arith.constant 0 : i32
    %c0_i32_0 = arith.constant 0 : i32
    %c0_i32_1 = arith.constant 0 : i32
    return %c0_i32, %c0_i32_0 : i32, i32
  }
  func.func @transform_4(%arg0: i32) -> (i32, i32) {
    %c0_i32 = arith.constant 0 : i32
    %c0_i32_0 = arith.constant 0 : i32
    %c0_i32_1 = arith.constant 0 : i32
    return %c0_i32, %c0_i32_0 : i32, i32
  }
  func.func @transform_5(%arg0: i32) -> (i32, i32) {
    %c0_i32 = arith.constant 0 : i32
    %c0_i32_0 = arith.constant 0 : i32
    %c0_i32_1 = arith.constant 0 : i32
    return %c0_i32, %c0_i32_0 : i32, i32
  }
  func.func @transform_6(%arg0: i32) -> (i32, i32) {
    %c0_i32 = arith.constant 0 : i32
    %c0_i32_0 = arith.constant 0 : i32
    %c0_i32_1 = arith.constant 0 : i32
    return %c0_i32, %c0_i32_0 : i32, i32
  }
  func.func @transform_7(%arg0: i32) -> (i32, i32) {
    %c0_i32 = arith.constant 0 : i32
    %c0_i32_0 = arith.constant 0 : i32
    %c0_i32_1 = arith.constant 0 : i32
    return %c0_i32, %c0_i32_0 : i32, i32
  }
  func.func @transform_8(%arg0: i32) -> (i32, i32) {
    %c0_i32 = arith.constant 0 : i32
    %c0_i32_0 = arith.constant 0 : i32
    %c0_i32_1 = arith.constant 0 : i32
    return %c0_i32, %c0_i32_0 : i32, i32
  }
  func.func @transform_9(%arg0: i32) -> (i32, i32) {
    %c0_i32 = arith.constant 0 : i32
    %c0_i32_0 = arith.constant 0 : i32
    %c0_i32_1 = arith.constant 0 : i32
    return %c0_i32, %c0_i32_0 : i32, i32
  }
  func.func @transform_10(%arg0: i32) -> (i32, i32, i32) {
    %c0_i32 = arith.constant 0 : i32
    %c0_i32_0 = arith.constant 0 : i32
    %c0_i32_1 = arith.constant 0 : i32
    return %arg0, %c0_i32, %c0_i32_0 : i32, i32, i32
  }
}

</mosaic_0001>

<bundles_post_ra>
// kernel: tpu_custom_call.1
= control target key start
LH: loop header
LB: loop body
LE: loop exit
PB: predicated region body
PF: predicated region fallthrough
CT: control target
= control target key end

     0   :  { %s1681_s0 = inlined_call_operand.hbm [shape: bf16[2,72,256], index: 0, kind: input, shape index: {}]   ;;  %s1682_s1 = inlined_call_operand.vmem [shape: f32[2,1,256], index: 1, kind: input, shape index: {}]   ;;  %s1683_s2 = inlined_call_operand.vmem [shape: bf16[12,72], index: 2, kind: input, shape index: {}]   ;;  %s1684_s3 = inlined_call_operand.vmem [shape: f32[12,1], index: 3, kind: input, shape index: {}]   ;;  %s1685_s4 = inlined_call_operand.vmem [shape: f32[12,1], index: 4, kind: input, shape index: {}]   ;;  %s1686_s5 = inlined_call_operand.vmem [shape: f32[8,1], index: 5, kind: input, shape index: {}]   ;;  %s1687_s6 = inlined_call_operand.<no memory space> [shape: f32[1,1], index: 6, kind: input, shape index: {}]   ;;  %s1688_s7 = inlined_call_operand.vmem [shape: bf16[4,72], index: 7, kind: input, shape index: {}]   ;;  %s1689_s8 = inlined_call_operand.vmem [shape: f32[4,1], index: 8, kind: input, shape index: {}]   ;;  %s1690_s9 = inlined_call_operand.vmem [shape: f32[4,1], index: 9, kind: input, shape index: {}]   ;;  %s1691_s10 = inlined_call_operand.hbm [shape: f32[2,8,256], index: 10, kind: output, shape index: {}]  }
   0x1   :  { %v15_v0 = vstv %s1687_s6 }
   0x2   :  { %16 = vst [vmem:[#allocation2] sm:$0x1] %v15_v0 }
   0x3   :  { %17 = vsyncpa [#allocation4], 0 }
   0x4   :  { %19 = vsyncpa [#allocation4 + $0x1], 0 }
   0x5   :  { %20 = vsyncpa [#allocation5], 0 }
   0x6   :  { %22 = vsyncpa [#allocation5 + $0x1], 0  ;;  %s1380_s15 = smov 0   ;;  %s1382_s16 = smov 0  }
   0x7   :  { %s1384_s17 = smov 0   ;;  %s1386_s18 = smov 0  }
   0x8 LB: > { %1694 = sst [smem:[#allocation9_spill]] %s1302_s17  ;;  %s1401_s6 = sadd.s32 4294967295, %s1306_s18   ;;  %s1306_s18 = sphi %s1386_s18, %s1707_s18   ;;  %s1302_s17 = sphi %s1384_s17, %s1704_s17   ;;  %s1298_s16 = sphi %s1382_s16, %s1706_s16   ;;  %s1294_s15 = sphi %s1380_s15, %s1705_s15  }
   0x9   : > { %s1040_s19 = sadd.s32 4294967294, %s1306_s18   ;;  %s1405_s20 = sadd.s32 1, %s1306_s18  }
   0xa   : > { %s35_s21 = sadd.s32 1, %s1302_s17  ;;  %s32_s22 = ssub.s32 %s1306_s18, %s1405_s20 }
   0xb   : > { %p42_p0 = scmp.ne.s32.totalorder %s1302_s17, %s1298_s16  ;;  %p33_p1 = scmp.eq.s32.totalorder %s32_s22, 0 }
   0xc   : > { %p43_p2 = scmp.eq.s32.totalorder %s1306_s18, 0  ;;  %p48_p3 = scmp.ne.s32.totalorder %s1298_s16, %s1294_s15 }
   0xd   : > { %p49_p4 = scmp.eq.s32.totalorder %s1401_s6, 0  ;;  %p266_p7 = scmp.eq.s32.totalorder %s1401_s6, 1 }
   0xe   : > { %s1417_s23 = scalar_select %p33_p1, %s1302_s17, %s35_s21  }
   0xf   : > { %p44_p5 = por %p43_p2, %p42_p0  ;;  %p1419_p6 = por %p49_p4, %p48_p3 }
  0x10   : > { %1695 = sst [smem:[#allocation10_spill]] %s1417_s23  ;;  %p272_p8 = scmp.eq.s32.totalorder %s1040_s19, 1 }
  0x11   : > { %p1111_p10 = scmp.lt.s32.totalorder %s1306_s18, 2  ;;  %p1426_p11 = por %p266_p7, %p42_p0 }
  0x12   : > { %p1430_p12 = por %p272_p8, %p48_p3  ;;  %s316_s27 = sand.u32 1, %s1302_s17  }
  0x13   : > { %s1697_s25 = scalar_select %p1426_p11, 1, 0 }
  0x14   : > { %s1698_s26 = scalar_select %p1430_p12, 1, 0 }
  0x15   : > { %s1097_s28 = smul.u32 1152, %s1306_s18  ;;  %p1441_p13 = pnand %p1111_p10, %p44_p5 }
  0x16   : > { %s1096_s29 = smul.u32 72, %s316_s27  ;;  %s1447_s21 = scalar_lea.sflag [#allocation4], %s316_s27 }
  0x17   : > { %s1439_s12 = scalar_lea.hbm %s1681_s0, %s1097_s28  ;;  %p1212_p1 = pneg %p1441_p13 }
  0x18   : > { %s320_s14 = scalar_lea.vmem [#allocation3], %s1096_s29  ;;  %s1210_s22 = scalar_lea.hbm %s1439_s12, 1152 }
  0x19   : > { %s327_s19 = sshll.u32 %s320_s14, 4  ;;  %p1211_p0 = scmp.ne.s32.totalorder %s1439_s12, %s1210_s22  ;;  %s1445_s19 = int_to_ptr.vmem [resolvable:$true] %s327_s19 }
  0x1a   : > { %s1215_s11 = scalar_lea.hbm %s1681_s0, 2304  ;;  %p1216_p4 = scmp.lt.u32.totalorder %s1439_s12, %s1681_s0 }
  0x1b   : > { %p1213_p2 = pnand %p1212_p1, %p1211_p0  ;;  %p1217_p5 = scmp.lt.u32.totalorder %s1215_s11, %s1210_s22 }
  0x1c   : > { %p1219_p8 = scmp.lt.u32.totalorder %s1210_s22, %s1439_s12 }
  0x1d   : > { %p1214_p3 = pneg %p1213_p2  ;;  %p1218_p7 = por %p1217_p5, %p1216_p4 }
  0x1f   : > { %p1220_p10 = por %p1219_p8, %p1218_p7 }
  0x21   : > { %p1221_p9 = pnand %p1220_p10, %p1214_p3 }
  0x23   : > { %1224 = shalt.err (!%p1221_p9)
}
  0x24   : > { %s1225_s27 = scalar_lea.vmem %s1445_s19, 1152  ;;  %s1308_s29 = smov [#allocation3]  }
  0x25   : > { %p1226_p0 = scmp.ne.s32.totalorder %s1445_s19, %s1225_s27  ;;  %s1230_s14 = sshll.u32 %s1308_s29, 4  ;;  %s1231_s14 = int_to_ptr.vmem [resolvable:$false] %s1230_s14 }
  0x26   : > { %s1232_s17 = scalar_lea.vmem %s1231_s14, 2304  ;;  %p1233_p11 = scmp.lt.s32.totalorder %s1445_s19, %s1231_s14 }
  0x27   : > { %p1228_p2 = pnand %p1226_p0, %p1212_p1  ;;  %p1234_p4 = scmp.lt.s32.totalorder %s1232_s17, %s1225_s27 }
  0x29   : > { %p1229_p12 = pneg %p1228_p2  ;;  %p1235_p5 = por %p1234_p4, %p1233_p11 }
  0x2b   : > { %p1236_p7 = pnand %p1235_p5, %p1229_p12 }
  0x2d   : > { %1239 = shalt.err (!%p1236_p7)
}
  0x2e   : > { %s1309_s23 = smov 128   ;;  %s1310_s22 = smov 8  }
  0x2f   : > { %1106 = dma.hbm_to_vmem [thread:$0]  (!%p1441_p13), %s1439_s12, 1152, %s1445_s19, %s1447_s21, %s1309_s23, %s1309_s23, %s1310_s22  }
  0x30   : > { %p1044_p9 = scmp.ge.s32.totalorder %s1306_s18, 1  ;;  %p342_p1 = scmp.lt.s32.totalorder %s1306_s18, 3 }
  0x32   : > { %p343_p3 = pnand %p1044_p9, %p342_p1 }
  0x33   : > { %s1478_s28 = sand.u32 (!%p343_p3), 1, %s1298_s16  }
  0x34   : > { %346 = sbr.rel (%p343_p3) target bundleno = 707 (0x2c3), region = 60  ;;  %s349_s11 = scalar_lea.sflag (!%p343_p3), [#allocation4], %s1478_s28 }
  0x35   : > { %s1098_s30 = smul.u32 (!%p343_p3), 72, %s1478_s28 }
  0x37   : > { %s1482_s27 = scalar_lea.vmem (!%p343_p3), [#allocation3], %s1098_s30 }
  0x3b   : > { %1285 = dma.done.wait (%p1419_p6), %s349_s11, 1152  }
  0x3c   : > { %1287 = vsyncadd (%p1419_p6), %s349_s11, 4294966144  ;;  %v1311_v1 = vmov 0   ;;  %v1493_v2 = vld [vmem:[%s1482_s27] sm:$0xff]  ;;  %v1496_v3 = vld [vmem:[%s1482_s27 + $0x8] sm:$0xff]  ;;  %vm463_vm0 = vcmask 1043456   ;;  %vm459_vm1 = vcmask 588800   ;;  %v575_v41 = vlaneseq }
  0x3d   : > { %502 = vmatprep.mubr.bf16.mxu0 %v1311_v1  ;;  %1157 = vset.pattern.permute.xlu0 %v1311_v1  ;;  %v1499_v4 = vld [vmem:[%s1482_s27 + $0x10] sm:$0xff]  ;;  %v1049_v5 = vcombine.high %v1493_v2, %v1496_v3  ;;  %v1048_v6 = vcombine.low %v1493_v2, %v1496_v3  ;;  %v1506_v7 = vld [vmem:[%s1482_s27 + $0x18] sm:$0xff]  ;;  %v1511_v9 = vld [vmem:[%s1482_s27 + $0x20] sm:$0xff]  ;;  %p393_p6 = scmp.lt.s32.totalorder %s1401_s6, 1  ;;  %s1313_s24 = smov 16   ;;  %vm625_vm9 = vcmask 130048  }
  0x3e   : > { %1158 = vset.pattern.permute.xlu1 %v1311_v1  ;;  %906 = vmatprep.mubr.bf16.mxu1 %v1311_v1  ;;  %v1051_v8 = vcombine.high %v1499_v4, %v1506_v7  ;;  %v1514_v10 = vld [vmem:[%s1482_s27 + $0x28] sm:$0xff]  ;;  %v1050_v11 = vcombine.low %v1499_v4, %v1506_v7  ;;  %v513_v12 = vld [vmem:[%s1684_s3] sm:$0xff]  ;;  %v576_v47 = vshrl.u32 %v575_v41, 7  ;;  %s1314_s12 = smov 17   ;;  %s1315_s13 = smov 1   ;;  %vm607_vm10 = vcmask 138240  }
  0x3f   : > { %470 = vmatprep.subr.bf16.mxu0 %v1049_v5  ;;  %v549_v13 = vld [vmem:[%s1686_s5] sm:$0xff]  ;;  %v1053_v14 = vcombine.high %v1511_v9, %v1514_v10  ;;  %517 = vperm.xlu0 %1157, %v513_v12   ;;  %v1052_v19 = vcombine.low %v1511_v9, %v1514_v10  ;;  %s394_s23 = scalar_select %p393_p6, %s1401_s6, 1  ;;  %vm661_vm11 = vcmask 7168   ;;  %vm643_vm12 = vcmask 121856  }
  0x40   : > { %471 = vmatpush1.bf16.msra.mxu0 %v1048_v6  ;;  %v1527_v15 = vld [vmem:[%s1482_s27 + $0x30] sm:$0xff]  ;;  %v1530_v16 = vld [vmem:[%s1482_s27 + $0x38] sm:$0xff]  ;;  %552 = vperm.xlu1 %1158, %v549_v13   ;;  %v1540_v21 = vld [vmem:[%s1482_s27 + $0x40] sm:$0xff]  ;;  %v592_v52 = vsub.s32 1, %v576_v47  ;;  %v1564_v54 = vsub.s32 0, %v576_v47  ;;  %s1316_s19 = smov 15  }
  0x41   : > { %472 = vmatprep.subr.bf16.mxu0 %v1051_v8  ;;  %v529_v17 = vld [vmem:[%s1685_s4] sm:$0xff]  ;;  %v1055_v20 = vcombine.high %v1527_v15, %v1530_v16  ;;  %v1054_v22 = vcombine.low %v1527_v15, %v1530_v16  ;;  %v1057_v23 = vcombine.high %v1540_v21, %v1540_v21  ;;  %v1056_v24 = vcombine.low %v1540_v21, %v1540_v21  ;;  %s1046_s22 = sshll.u32 %s394_s23, 1  ;;  %s1317_s21 = smov 113  }
  0x42   : > { %v569_v18 = vld [vmem:[#allocation2] sm:$0x1]  ;;  %s396_s27 = scalar_lea.vmem %s1682_s1, %s1046_s22  ;;  %s1318_s29 = smov 127   ;;  %vm704_vm13 = vcmask 924672   ;;  %vm686_vm14 = vcmask 1039360   ;;  %vm740_vm15 = vcmask 908288  }
  0x43   : > { %533 = vperm.xlu0 %1157, %v529_v17   ;;  %v465_v25 = vsel %vm463_vm0, %v1056_v24, 0  ;;  %v1209_v26 = vld [vmem:[%s1683_s2] sm:$0x3f]   ;;  %s1319_s14 = smov 111   ;;  %s1320_s17 = smov 112  }
  0x44   : > { %473 = vmatpush1.bf16.msra.mxu0 %v1050_v11  ;;  %572 = vperm.xlu1 %1158, %v569_v18   ;;  %v583_v43 = vld [vmem:[%s396_s27] sm:$0x3]  ;;  %v530_v18 = vld [vmem:[%s1685_s4 + $0x8] sm:$0xf]  ;;  %p1700_p12 = scmp.ne.s32.totalorder %s1697_s25, 0 }
  0x45   : > { %474 = vmatprep.subr.bf16.mxu0 %v1053_v14  ;;  %vm584_vm2 = vcmp.ne.f32.partialorder %v583_v43, 0.0 }
  0x46   : > { %v585_v51 = vsel %vm584_vm2, 1, %v1311_v1  ;;  %v1312_v1 = vmov 0.0   ;;  %vm722_vm2 = vcmask 916480  }
  0x47   : > { %v589_v57 = vrot.slane %v585_v51, %v1564_v54  ;;  %v593_v59 = vrot.slane %v585_v51, %v592_v52 }
  0x48   : > { %475 = vmatpush1.bf16.msra.mxu0 %v1052_v19  ;;  %v514_v19 = vld [vmem:[%s1684_s3 + $0x8] sm:$0xf] }
  0x49   : > { %476 = vmatprep.subr.bf16.mxu0 %v1055_v20  ;;  %vm594_vm3 = vcmp.ne.s32.totalorder %v589_v57, 0  ;;  %vm595_vm4 = vcmp.ne.s32.totalorder %v593_v59, 0  ;;  %v923_v20 = vld [vmem:[%s1690_s9] sm:$0xf] }
  0x4c   : > { %477 = vmatpush1.bf16.msra.mxu0 %v1054_v22  ;;  %v915_v22 = vld [vmem:[%s1689_s8] sm:$0xf] }
  0x4d   : > { %1058 = vmatprep.subr.msk.bf16.mxu0 %vm463_vm0, %v1057_v23 }
  0x50   : > { %479 = vmatpush1.bf16.msra.mxu0 %v465_v25 }
  0x53   : > { %1059 = vmatmul.mubr.msk.bf16.vlgmr.msra.gmra.mrb[0].mxu0 %vm459_vm1, %v1209_v26 }
  0xbe   : > { %v518_v27 = vpop.permute.xlu0 %517 }
  0xbf   : > { %v553_v39 = vpop.permute.xlu1 %552 }
  0xc2   : > { %v534_v31 = vpop.permute.xlu0 %533 }
  0xc3   : > { %v573_v56 = vpop.permute.xlu1 %572 }
  0xc4   : > { %v578_v62 = vrot.slane %v573_v56, %v1564_v54 }
 0x126   : > { %v504_v28 = vpop.f32.mrb[0].mxu0 }
 0x127   : > { %v525_v29 = vmul.f32 %v518_v27, %v504_v28  ;;  %v506_v30 = vpop.f32.mrb[1].mxu0 }
 0x128   : > { %v526_v32 = vmul.f32 %v518_v27, %v506_v30  ;;  %v1556_v33 = vpop.f32.mrb[2].mxu0 }
 0x129   : > { %v541_v34 = vadd.f32 %v534_v31, %v525_v29  ;;  %v1558_v35 = vpop.f32.mrb[3].mxu0 }
 0x12a   : > { %v542_v36 = vadd.f32 %v534_v31, %v526_v32 }
 0x12b   : > { %v545_v37 = vmax.f32 %v541_v34, 0.0 }
 0x12c   : > { %v546_v38 = vmax.f32 %v542_v36, 0.0 }
 0x12d   : > { %v555_v40 = vmul.f32 %v553_v39, %v545_v37 }
 0x12e   : > { %v556_v42 = vmul.f32 %v553_v39, %v546_v38 }
 0x12f   : > { %v557_v44 = vrot.slane %v555_v40, 4 }
 0x130   : > { %v563_v45 = vrot.slane %v556_v42, 4 }
 0x131   : > { %v558_v46 = vadd.f32 %v557_v44, %v555_v40 }
 0x132   : > { %v564_v48 = vadd.f32 %v563_v45, %v556_v42 }
 0x133   : > { %v559_v49 = vrot.slane %v558_v46, 2 }
 0x134   : > { %v565_v50 = vrot.slane %v564_v48, 2 }
 0x135   : > { %v560_v53 = vadd.f32 %v559_v49, %v558_v46 }
 0x136   : > { %v566_v55 = vadd.f32 %v565_v50, %v564_v48 }
 0x137   : > { %v561_v58 = vrot.slane %v560_v53, 1 }
 0x138   : > { %v567_v60 = vrot.slane %v566_v55, 1 }
 0x139   : > { %v562_v61 = vadd.f32 %v561_v58, %v560_v53 }
 0x13a   : > { %v568_v63 = vadd.f32 %v567_v60, %v566_v55 }
 0x13b   : > { %v579_v0 = vadd.f32 %v578_v62, %v562_v61 }
 0x13c   : > { %v580_v5 = vadd.f32 %v578_v62, %v568_v63 }
 0x13d   : > { %vm581_vm5 = vcmp.gt.f32.partialorder %v579_v0, 0.0 }
 0x13e   : > { %vm582_vm6 = vcmp.gt.f32.partialorder %v580_v5, 0.0  ;;  %vm596_vm7 = vmor %vm581_vm5, %vm594_vm3 }
 0x13f   : > { %vm597_vm8 = vmor %vm582_vm6, %vm595_vm4  ;;  %v598_v6 = vsel %vm596_vm7, 1.0, %v1312_v1 }
 0x140   : > { %v599_v8 = vsel %vm597_vm8, 1.0, %v1312_v1  ;;  %v677_v11 = vrot.slane %v598_v6, %v1564_v54 }
 0x141   : > { %v1164_v12 = vpack.i.bf16 %v598_v6, %v599_v8  ;;  %v1184_v13 = vpack.i.bf16 %v599_v8, %v598_v6  ;;  %v681_v14 = vrot.slane %v599_v8, %v1564_v54 }
 0x143   : > { %1165 = vrot.lane.b32.xlu1 %v1164_v12, %s1313_s24  ;;  %1160 = vrot.lane.b32.xlu0 %v1164_v12, %s1314_s12  ;;  %v1570_v17 = vpack.c.bf16 %v681_v14, %v677_v11  ;;  %s1321_s24 = smov [#allocation6]  }
 0x144   : > { %s1244_s12 = sshll.u32 %s1321_s24, 4  ;;  %s1245_s12 = int_to_ptr.vmem [resolvable:$false] %s1244_s12 }
 0x147   : > { %1175 = vrot.lane.b32.xlu1 %v1164_v12, %s1315_s13  ;;  %1170 = vrot.lane.b32.xlu0 %v1164_v12, %s1316_s19  ;;  %s1246_s13 = scalar_lea.vmem %s1245_s12, 512 }
 0x14b   : > { %1185 = vrot.lane.b32.xlu1 %v1184_v13, %s1317_s21  ;;  %1180 = vrot.lane.b32.xlu0 %v1184_v13, %s1318_s29  ;;  %s1045_s29 = sshll.u32 %s1478_s28, 4 }
 0x14f   : > { %1195 = vrot.lane.b32.xlu1 %v1184_v13, %s1319_s14  ;;  %1190 = vrot.lane.b32.xlu0 %v1184_v13, %s1320_s17  ;;  %s1095_s14 = sshll.u32 %s1401_s6, 8  ;;  %s392_s17 = scalar_lea.vmem [#allocation6], %s1045_s29 }
 0x150   : > { %s958_s23 = sshll.u32 %s392_s17, 4  ;;  %s1636_s11 = scalar_lea.hbm %s1691_s10, %s1095_s14  ;;  %s1638_s23 = int_to_ptr.vmem [resolvable:$true] %s958_s23 }
 0x151   : > { %s944_s6 = scalar_lea.sflag [#allocation5], %s1478_s28  ;;  %s1240_s27 = scalar_lea.vmem %s1638_s23, 256 }
 0x152   : > { %p1241_p11 = scmp.ne.s32.totalorder %s1638_s23, %s1240_s27  ;;  %p1247_p10 = scmp.lt.s32.totalorder %s1638_s23, %s1245_s12 }
 0x153   : > { %538 = vperm.xlu1 %1158, %v530_v18   ;;  %522 = vperm.xlu0 %1157, %v514_v19   ;;  %p1248_p0 = scmp.lt.s32.totalorder %s1246_s13, %s1240_s27 }
 0x154   : > { %p1242_p13 = pnand %p1241_p11, %p1700_p12 }
 0x155   : > { %p1249_p2 = por %p1248_p0, %p1247_p10 }
 0x156   : > { %p1243_p8 = pneg %p1242_p13 }
 0x157   : > { %926 = vperm.xlu1 %1158, %v923_v20   ;;  %918 = vperm.xlu0 %1157, %v915_v22  }
 0x158   : > { %p1250_p4 = pnand %p1249_p2, %p1243_p8 }
 0x1b5   : > { %v1166_v23 = vpop.permute.xlu1 %1165  ;;  %v1161_v24 = vpop.permute.xlu0 %1160 }
 0x1b6   : > { %v1168_v25 = vunpack.i.h.bf16 %v1166_v23  ;;  %v1167_v26 = vunpack.i.l.bf16 %v1166_v23  ;;  %v1163_v27 = vunpack.i.h.bf16 %v1161_v24  ;;  %v1162_v28 = vunpack.i.l.bf16 %v1161_v24 }
 0x1b8   : > { %v626_v29 = vsel %vm625_vm9, %v1168_v25, %v1167_v26  ;;  %v629_v30 = vsel %vm625_vm9, %v1167_v26, %v1168_v25  ;;  %v608_v31 = vsel %vm607_vm10, %v1163_v27, %v1162_v28  ;;  %v611_v32 = vsel %vm607_vm10, %v1162_v28, %v1163_v27 }
 0x1b9   : > { %v1176_v34 = vpop.permute.xlu1 %1175  ;;  %v1171_v36 = vpop.permute.xlu0 %1170  ;;  %v615_v37 = vrot.slane %v611_v32, %v1564_v54  ;;  %v619_v38 = vrot.slane %v608_v31, %v1564_v54  ;;  %v633_v39 = vrot.slane %v629_v30, %v1564_v54  ;;  %v637_v40 = vrot.slane %v626_v29, %v1564_v54 }
 0x1ba   : > { %v1178_v41 = vunpack.i.h.bf16 %v1176_v34  ;;  %v1177_v42 = vunpack.i.l.bf16 %v1176_v34  ;;  %v1173_v43 = vunpack.i.h.bf16 %v1171_v36  ;;  %v1172_v44 = vunpack.i.l.bf16 %v1171_v36 }
 0x1bb   : > { %v1086_v45 = vpack.c.bf16 %v619_v38, %v615_v37  ;;  %v1087_v46 = vpack.c.bf16 %v637_v40, %v633_v39 }
 0x1bc   : > { %v662_v47 = vsel %vm661_vm11, %v1178_v41, %v1177_v42  ;;  %v665_v48 = vsel %vm661_vm11, %v1177_v42, %v1178_v41  ;;  %v644_v49 = vsel %vm643_vm12, %v1173_v43, %v1172_v44  ;;  %v647_v50 = vsel %vm643_vm12, %v1172_v44, %v1173_v43 }
 0x1bd   : > { %v669_v51 = vrot.slane %v665_v48, %v1564_v54  ;;  %v673_v52 = vrot.slane %v662_v47, %v1564_v54  ;;  %v651_v53 = vrot.slane %v647_v50, %v1564_v54  ;;  %v655_v55 = vrot.slane %v644_v49, %v1564_v54  ;;  %v1186_v56 = vpop.permute.xlu1 %1185  ;;  %v1181_v57 = vpop.permute.xlu0 %1180 }
 0x1be   : > { %v1188_v58 = vunpack.i.h.bf16 %v1186_v56  ;;  %v1187_v59 = vunpack.i.l.bf16 %v1186_v56  ;;  %v1183_v60 = vunpack.i.h.bf16 %v1181_v57  ;;  %v1182_v61 = vunpack.i.l.bf16 %v1181_v57 }
 0x1bf   : > { %v810_v62 = vmul.bf16 %v1086_v45, %v1493_v2  ;;  %v811_v63 = vmul.bf16 %v1087_v46, %v1496_v3  ;;  %v1088_v0 = vpack.c.bf16 %v655_v55, %v651_v53  ;;  %v1089_v5 = vpack.c.bf16 %v673_v52, %v669_v51 }
 0x1c0   : > { %v705_v1 = vsel %vm704_vm13, %v1187_v59, %v1188_v58  ;;  %v709_v6 = vsel %vm704_vm13, %v1188_v58, %v1187_v59  ;;  %v687_v8 = vsel %vm686_vm14, %v1182_v61, %v1183_v60  ;;  %v691_v11 = vsel %vm686_vm14, %v1183_v60, %v1182_v61 }
 0x1c1   : > { %v713_v12 = vrot.slane %v705_v1, %v1564_v54  ;;  %v717_v13 = vrot.slane %v709_v6, %v1564_v54  ;;  %v695_v14 = vrot.slane %v687_v8, %v1564_v54  ;;  %v699_v2 = vrot.slane %v691_v11, %v1564_v54  ;;  %v1196_v18 = vpop.permute.xlu1 %1195  ;;  %v1191_v3 = vpop.permute.xlu0 %1190 }
 0x1c2   : > { %v1198_v19 = vunpack.i.h.bf16 %v1196_v18  ;;  %v1197_v20 = vunpack.i.l.bf16 %v1196_v18  ;;  %v1193_v22 = vunpack.i.h.bf16 %v1191_v3  ;;  %v1192_v23 = vunpack.i.l.bf16 %v1191_v3 }
 0x1c3   : > { %v1070_v24 = vcombine.high %v810_v62, %v811_v63  ;;  %v1069_v25 = vcombine.low %v810_v62, %v811_v63  ;;  %v812_v26 = vmul.bf16 %v1088_v0, %v1499_v4  ;;  %v813_v27 = vmul.bf16 %v1089_v5, %v1506_v7 }
 0x1c4   : > { %v741_v28 = vsel %vm740_vm15, %v1197_v20, %v1198_v19  ;;  %v745_v29 = vsel %vm740_vm15, %v1198_v19, %v1197_v20  ;;  %v723_v30 = vsel %vm722_vm2, %v1192_v23, %v1193_v22  ;;  %v727_v31 = vsel %vm722_vm2, %v1193_v22, %v1192_v23 }
 0x1c5   : > { %v749_v32 = vrot.slane %v741_v28, %v1564_v54  ;;  %v753_v34 = vrot.slane %v745_v29, %v1564_v54  ;;  %v731_v36 = vrot.slane %v723_v30, %v1564_v54  ;;  %v735_v37 = vrot.slane %v727_v31, %v1564_v54  ;;  %874 = vmatprep.subr.bf16.mxu1 %v1070_v24 }
 0x1c6   : > { %875 = vmatpush1.bf16.msra.mxu1 %v1069_v25  ;;  %v1072_v4 = vcombine.high %v812_v26, %v813_v27  ;;  %v1071_v7 = vcombine.low %v812_v26, %v813_v27  ;;  %v1091_v38 = vpack.c.bf16 %v699_v2, %v695_v14  ;;  %v1092_v39 = vpack.c.bf16 %v717_v13, %v713_v12 }
 0x1c7   : > { %v1093_v40 = vpack.c.bf16 %v735_v37, %v731_v36  ;;  %v814_v41 = vmul.bf16 %v1570_v17, %v1511_v9  ;;  %v1094_v43 = vpack.c.bf16 %v753_v34, %v749_v32 }
 0x1c8   : > { %876 = vmatprep.subr.bf16.mxu1 %v1072_v4  ;;  %v815_v42 = vmul.bf16 %v1091_v38, %v1514_v10  ;;  %v816_v44 = vmul.bf16 %v1092_v39, %v1527_v15  ;;  %v819_v15 = vld [vmem:[%s1688_s7] sm:$0x3] }
 0x1c9   : > { %v817_v45 = vmul.bf16 %v1093_v40, %v1530_v16  ;;  %v818_v48 = vmul.bf16 %v1094_v43, %v1540_v21 }
 0x1ca   : > { %877 = vmatpush1.bf16.msra.mxu1 %v1071_v7  ;;  %v1074_v54 = vcombine.high %v814_v41, %v815_v42  ;;  %v1073_v46 = vcombine.low %v814_v41, %v815_v42 }
 0x1cb   : > { %v1076_v47 = vcombine.high %v816_v44, %v817_v45  ;;  %v1075_v49 = vcombine.low %v816_v44, %v817_v45  ;;  %v1078_v50 = vcombine.high %v818_v48, %v818_v48  ;;  %v1077_v9 = vcombine.low %v818_v48, %v818_v48 }
 0x1cc   : > { %878 = vmatprep.subr.bf16.mxu1 %v1074_v54 }
 0x1cd   : > { %v869_v10 = vsel %vm463_vm0, %v1077_v9, 0 }
 0x1ce   : > { %879 = vmatpush1.bf16.msra.mxu1 %v1073_v46 }
 0x1cf   : > { %880 = vmatprep.subr.bf16.mxu1 %v1076_v47 }
 0x1d2   : > { %881 = vmatpush1.bf16.msra.mxu1 %v1075_v49  ;;  %v523_v16 = vpop.permute.xlu0 %522  ;;  %v539_v51 = vpop.permute.xlu1 %538 }
 0x1d3   : > { %1079 = vmatprep.subr.msk.bf16.mxu1 %vm463_vm0, %v1078_v50  ;;  %v527_v21 = vmul.f32 %v523_v16, %v1556_v33  ;;  %v528_v17 = vmul.f32 %v523_v16, %v1558_v35 }
 0x1d5   : > { %v543_v52 = vadd.f32 %v539_v51, %v527_v21  ;;  %v544_v53 = vadd.f32 %v539_v51, %v528_v17 }
 0x1d6   : > { %883 = vmatpush1.bf16.msra.mxu1 %v869_v10  ;;  %v919_v55 = vpop.permute.xlu0 %918  ;;  %v927_v61 = vpop.permute.xlu1 %926 }
 0x1d7   : > { %v547_v57 = vmax.f32 %v543_v52, 0.0  ;;  %v548_v60 = vmax.f32 %v544_v53, 0.0 }
 0x1d9   : > { %1080 = vmatmul.mubr.msk.bf16.vlgmr.msra.gmra.mrb[0].mxu1 %vm459_vm1, %v819_v15  ;;  %v935_v35 = vrot.slane %v547_v57, 4  ;;  %v936_v6 = vrot.slane %v548_v60, 4 }
 0x2ac   : > { %v908_v56 = vpop.f32.mrb[0].mxu1 }
 0x2ad   : > { %v921_v58 = vmul.f32 %v919_v55, %v908_v56  ;;  %v910_v59 = vpop.f32.mrb[1].mxu1 }
 0x2ae   : > { %v922_v62 = vmul.f32 %v919_v55, %v910_v59  ;;  %v912_v63 = vpop.f32.mrb[2].mxu1 }
 0x2af   : > { %v929_v0 = vadd.f32 %v927_v61, %v921_v58  ;;  %v913_v5 = vpop.f32.mrb[3].mxu1 }
 0x2b0   : > { %v930_v33 = vadd.f32 %v927_v61, %v922_v62 }
 0x2b1   : > { %v931_v1 = vmax.f32 %v929_v0, 0.0 }
 0x2b2   : > { %v932_v8 = vmax.f32 %v930_v33, 0.0 }
 0x2b3   : > { %v939_v11 = vsel %vm463_vm0, %v931_v1, %v935_v35 }
 0x2b4   : > { %v940_v12 = vsel %vm463_vm0, %v932_v8, %v936_v6  ;;  %941 = vst [vmem:[%s392_s17] sm:$0xff] %v939_v11 }
 0x2b5   : > { %942 = vst [vmem:[%s392_s17 + $0x8] sm:$0xff] %v940_v12 }
 0x2b6   : > { %1253 = shalt.err (!%p1250_p4)
}
 0x2b7   : > { %s1254_s28 = scalar_lea.hbm %s1636_s11, 256  ;;  %s1258_s29 = scalar_lea.hbm %s1691_s10, 512 }
 0x2b8   : > { %p1255_p5 = scmp.ne.s32.totalorder %s1636_s11, %s1254_s28  ;;  %p1259_p1 = scmp.lt.u32.totalorder %s1636_s11, %s1691_s10 }
 0x2b9   : > { %p1260_p3 = scmp.lt.u32.totalorder %s1258_s29, %s1254_s28  ;;  %p1262_p11 = scmp.lt.u32.totalorder %s1254_s28, %s1636_s11 }
 0x2ba   : > { %p1256_p7 = pnand %p1255_p5, %p1700_p12 }
 0x2bb   : > { %p1261_p6 = por %p1260_p3, %p1259_p1 }
 0x2bc   : > { %p1257_p9 = pneg %p1256_p7 }
 0x2bd   : > { %p1263_p13 = por %p1262_p11, %p1261_p6 }
 0x2bf   : > { %p1264_p8 = pnand %p1263_p13, %p1257_p9 }
 0x2c1   : > { %1267 = shalt.err (!%p1264_p8)
}
 0x2c2   : > { %1101 = dma.vmem_to_hbm [thread:$0]  (%p1700_p12), %s1638_s23, 256, %s1636_s11, %s944_s6  }
 0x2c3 PF: > { %s970_s22 = sand.u32 1, %s1294_s15   ;;  %p1701_p10 = scmp.ne.s32.totalorder %s1698_s26, 0 }
 0x2c4   : > { %p1702_p0 = scmp.ge.s32.totalorder %s1306_s18, 2  ;;  %s971_s30 = scalar_lea.sflag [#allocation5], %s970_s22 }
 0x2c6   : > { %p1108_p2 = pnand %p1702_p0, %p1701_p10 }
 0x2c8   : > { %1289 = dma.done.wait (!%p1108_p2), %s971_s30, 256  }
 0x2c9   : > { %1291 = vsyncadd (!%p1108_p2), %s971_s30, 4294967040  ;;  %s1703_s27 = sld [smem:[#allocation9_spill]]  ;;  %s1704_s17 = sld [smem:[#allocation10_spill]] }
 0x2ca   : > { %p25_p4 = scmp.ge.s32.totalorder %s1405_s20, 4   ;;  %s1705_s15 = smov %s1298_s16 }
 0x2cb   : > { %s1707_s18 = smov %s1405_s20 }
 0x2cc   :  { %27 = sbr.rel (!%p25_p4) target bundleno = 8 (0x8), region = 108 }
 0x2cf   : > { %s1706_s16 = smov %s1703_s27 }
 0x2d3   :  { %976 = vsyncpa [#allocation4], 1 }
 0x2d4   :  { %978 = vsyncpa [#allocation4 + $0x1], 1 }
 0x2d5   :  { %979 = vsyncpa [#allocation5], 1 }
 0x2d6   :  { %981 = vsyncpa [#allocation5 + $0x1], 1 }

</bundles_post_ra>
